<compile_context>
chip_gen: v5e
topology: v5e:2x2
jax: 0.10.0
libtpu: 0.0.40
codegen_flags: <defaults>
</compile_context>

<pallas_src>
import jax
import jax.numpy as jnp
from jax import lax
from jax.experimental import pallas as pl
from jax.experimental.pallas import tpu as pltpu


def overlap_patch_embed_pallas(x, w, b, gamma, beta, *, patch_size=3, stride=2,
                               padding=1, dilation=1, p2size=10, eps=1e-5,
                               token_tile=256, mxu_dtype=jnp.bfloat16):
    """x: (B, in_ch, H, W) NCHW; w: (dim, in_ch, k, k); b/gamma/beta: (dim,).

    Returns (nfx, p2size, p2size) matching the PyTorch module:
    nfx is (B, p2size**2, dim).
    """
    B, Cin, Hi, Wi = x.shape
    dim = w.shape[0]
    k, s, p, d = patch_size, stride, padding, dilation

    H1 = (Hi + 2 * p - d * (k - 1) - 1) // s + 1
    W1 = (Wi + 2 * p - d * (k - 1) - 1) // s + 1
    assert p2size >= H1 and (p2size - H1) % 2 == 0, \
        "TODO(synk): crop / odd-difference padding path not implemented"
    pe = (p2size - H1) // 2           # pad (each side) on the conv-output grid
    P = H1 + 2 * pe                   # padded token-grid side (== p2size)

    K = Cin * k * k
    Ka = K + 1                        # +1 indicator column carrying the conv bias

    # ---- im2col: (B, in_ch, Hi, Wi) -> (B, H1, W1, K)  (layout glue) ----
    # TODO(synk): fuse this strided patch extraction in-kernel via halo DMA.
    xp = jnp.pad(x, ((0, 0), (0, 0), (p, p), (p, p)))
    taps = []
    for kh in range(k):
        for kw in range(k):
            h0, w0 = kh * d, kw * d
            taps.append(lax.slice(
                xp, (0, 0, h0, w0),
                (B, Cin, h0 + (H1 - 1) * s + 1, w0 + (W1 - 1) * s + 1),
                (1, 1, s, s)))                                   # (B, Cin, H1, W1)
    pat = jnp.stack(taps, axis=2)                                # (B, Cin, k*k, H1, W1)
    pat = jnp.transpose(pat, (0, 3, 4, 1, 2)).reshape(B, H1, W1, K)

    # indicator column: 1.0 for real conv tokens, 0.0 after fuse-padding
    pat = jnp.concatenate([pat, jnp.ones((B, H1, W1, 1), pat.dtype)], axis=-1)
    # fuse-padding directly on the patch tensor: zero patches (incl. indicator)
    # -> matmul acc == 0 -> LayerNorm(0) == beta, exactly as the reference.
    pat = jnp.pad(pat, ((0, 0), (pe, pe), (pe, pe), (0, 0)))     # (B, P, P, Ka)
    Ntok = P * P
    pat = pat.reshape(B, Ntok, Ka)

    # token tiling: TM tokens per grid step (large M for the MXU)
    if Ntok <= token_tile:
        TM = ((Ntok + 15) // 16) * 16          # sublane-friendly full block
    else:
        TM = token_tile
    Ntok_pad = pl.cdiv(Ntok, TM) * TM
    if Ntok_pad != Ntok:
        pat = jnp.pad(pat, ((0, 0), (0, Ntok_pad - Ntok), (0, 0)))
    pat = pat.astype(mxu_dtype)

    # weight (dim, Cin, k, k) -> (K, dim), row = cin*k*k + kh*k + kw; + bias row
    w_mat = jnp.transpose(w, (1, 2, 3, 0)).reshape(K, dim)
    w_mat = jnp.concatenate([w_mat, b.reshape(1, dim)], axis=0).astype(mxu_dtype)

    # LayerNorm params packed into one sublane-padded block: row0=gamma, row1=beta
    prm = jnp.zeros((8, dim), jnp.float32).at[0].set(gamma).at[1].set(beta)

    out_dtype = x.dtype
    n_tiles = Ntok_pad // TM

    def kernel(pat_ref, w_ref, prm_ref, o_ref):
        # pat_ref: (TM, Ka) bf16; w_ref: (Ka, dim) bf16; prm_ref: (8, dim) f32
        acc = jnp.dot(pat_ref[...], w_ref[...],
                      preferred_element_type=jnp.float32)        # (TM, dim) f32
        # fused LayerNorm over dim (lane axis), f32
        mu = jnp.mean(acc, axis=-1, keepdims=True)
        xc = acc - mu
        var = jnp.mean(xc * xc, axis=-1, keepdims=True)
        y = xc * lax.rsqrt(var + eps) * prm_ref[0, :] + prm_ref[1, :]
        o_ref[...] = y.astype(out_dtype)                         # one unmasked store

    out = pl.pallas_call(
        kernel,
        out_shape=jax.ShapeDtypeStruct((B, Ntok_pad, dim), out_dtype),
        grid_spec=pltpu.PrefetchScalarGridSpec(
            num_scalar_prefetch=0,
            grid=(B, n_tiles),
            in_specs=[
                pl.BlockSpec((None, TM, Ka), lambda bi, ti: (bi, ti, 0)),
                pl.BlockSpec((Ka, dim), lambda bi, ti: (0, 0)),
                pl.BlockSpec((8, dim), lambda bi, ti: (0, 0)),
            ],
            out_specs=pl.BlockSpec((None, TM, dim), lambda bi, ti: (bi, ti, 0)),
        ),
        compiler_params=pltpu.CompilerParams(
            dimension_semantics=("parallel", "parallel")),
    )(pat, w_mat, prm)

    return out[:, :Ntok, :], p2size, p2size


def _reference(x, w, b, gamma, beta, *, stride, padding, dilation, p2size, eps=1e-5):
    """Pure-JAX reference matching the PyTorch forward (f32, HIGHEST precision)."""
    B, Cin, Hi, Wi = x.shape
    dim = w.shape[0]
    px = lax.conv_general_dilated(
        x, w, window_strides=(stride, stride),
        padding=((padding, padding), (padding, padding)),
        rhs_dilation=(dilation, dilation),
        dimension_numbers=("NCHW", "OIHW", "NCHW"),
        precision=lax.Precision.HIGHEST)
    px = px + b.reshape(1, dim, 1, 1)
    H1 = px.shape[2]
    if H1 != p2size:
        pe = (p2size - H1) // 2
        px = jnp.pad(px, ((0, 0), (0, 0), (pe, pe), (pe, pe)))
    fx = jnp.transpose(px.reshape(B, dim, -1), (0, 2, 1))        # (B, N, dim)
    mu = jnp.mean(fx, axis=-1, keepdims=True)
    var = jnp.mean((fx - mu) ** 2, axis=-1, keepdims=True)
    return (fx - mu) / jnp.sqrt(var + eps) * gamma + beta


if __name__ == "__main__":
    key = jax.random.PRNGKey(0)
    B, Cin, img = 2, 3, 16
    dim = 128                      # multiple of 128 -> lane-dense blocks
    k, s, p, d = 3, 2, 1, 1        # conv: kernel 3, stride 2, pad 1
    p2size = 10                    # conv output is 8x8 -> fuse-padded to 10x10

    kx, kw, kb, kg, kbt = jax.random.split(key, 5)
    x = jax.random.normal(kx, (B, Cin, img, img), dtype=jnp.float32)
    w = jax.random.normal(kw, (dim, Cin, k, k), dtype=jnp.float32) * 0.1
    b = jax.random.normal(kb, (dim,), dtype=jnp.float32) * 0.1
    gamma = 1.0 + 0.1 * jax.random.normal(kg, (dim,), dtype=jnp.float32)
    beta = 0.1 * jax.random.normal(kbt, (dim,), dtype=jnp.float32)

    out, H, W = overlap_patch_embed_pallas(
        x, w, b, gamma, beta, patch_size=k, stride=s, padding=p,
        dilation=d, p2size=p2size)
    out = jax.block_until_ready(out)

    assert out.shape == (B, p2size * p2size, dim)
    assert H == p2size and W == p2size

    # Tight check: reference on bf16-rounded inputs (same operands the MXU sees).
    def _r(t):
        return t.astype(jnp.bfloat16).astype(jnp.float32)
    ref_bf = jax.block_until_ready(_reference(
        _r(x), _r(w), _r(b), gamma, beta,
        stride=s, padding=p, dilation=d, p2size=p2size))
    assert jnp.allclose(out, ref_bf, atol=2e-3, rtol=2e-3), \
        float(jnp.max(jnp.abs(out - ref_bf)))

    # Loose check: full-f32 reference (bf16 MXU operands -> relaxed tolerance).
    ref = jax.block_until_ready(_reference(
        x, w, b, gamma, beta, stride=s, padding=p, dilation=d, p2size=p2size))
    assert jnp.allclose(out, ref, atol=5e-2, rtol=5e-2), \
        float(jnp.max(jnp.abs(out - ref)))

    print("KERNEL_OK")
</pallas_src>

<mosaic_0001>
module attributes {stable_mosaic.version = 11 : i64} {
  func.func @kernel(%arg0: i32, %arg1: i32, %arg2: memref<1x112x28xbf16, #tpu.memory_space<vmem>>, %arg3: memref<28x128xbf16, #tpu.memory_space<vmem>>, %arg4: memref<8x128xf32, #tpu.memory_space<vmem>>, %arg5: memref<1x112x128xf32, #tpu.memory_space<vmem>>) attributes {dimension_semantics = [#tpu.dimension_semantics<parallel>, #tpu.dimension_semantics<parallel>], iteration_bounds = array<i64: 2, 1>, scalar_prefetch = 0 : i64, scratch_operands = 0 : i64, tpu.core_type = #tpu.core_type<tc>, window_params = [{transform_indices = @transform_0, window_bounds = array<i64: 1, 112, 28>}, {pipeline_mode = #tpu.pipeline_mode<synchronous>, transform_indices = @transform_1, window_bounds = array<i64: 28, 128>}, {pipeline_mode = #tpu.pipeline_mode<synchronous>, transform_indices = @transform_2, window_bounds = array<i64: 8, 128>}, {transform_indices = @transform_3, window_bounds = array<i64: 1, 112, 128>}]} {
    %c0 = arith.constant 0 : index
    %c0_0 = arith.constant 0 : index
    %c0_1 = arith.constant 0 : index
    %0 = vector.load %arg2[%c0, %c0_0, %c0_1] : memref<1x112x28xbf16, #tpu.memory_space<vmem>>, vector<1x112x28xbf16>
    %1 = vector.shape_cast %0 : vector<1x112x28xbf16> to vector<112x28xbf16>
    %c0_2 = arith.constant 0 : index
    %c0_3 = arith.constant 0 : index
    %2 = vector.load %arg3[%c0_2, %c0_3] : memref<28x128xbf16, #tpu.memory_space<vmem>>, vector<28x128xbf16>
    %cst = arith.constant dense<0.000000e+00> : vector<112x128xf32>
    %3 = tpu.matmul %1, %2, %cst {dimension_numbers = #tpu.dot_dimension_numbers<[1], [0], [0], [1], [0, 0, 1, 1], [], []>} : vector<112x28xbf16>, vector<28x128xbf16>, vector<112x128xf32> -> vector<112x128xf32>
    %cst_4 = arith.constant dense<0.000000e+00> : vector<112xf32>
    %4 = vector.multi_reduction <add>, %3, %cst_4 [1] : vector<112x128xf32> to vector<112xf32>
    %5 = vector.shape_cast %4 : vector<112xf32> to vector<112x1xf32>
    %cst_5 = arith.constant 1.280000e+02 : f32
    %6 = vector.broadcast %cst_5 : f32 to vector<112x1xf32>
    %7 = arith.divf %5, %6 : vector<112x1xf32>
    %8 = vector.broadcast %7 : vector<112x1xf32> to vector<112x128xf32>
    %9 = arith.subf %3, %8 : vector<112x128xf32>
    %10 = arith.mulf %9, %9 : vector<112x128xf32>
    %cst_6 = arith.constant dense<0.000000e+00> : vector<112xf32>
    %11 = vector.multi_reduction <add>, %10, %cst_6 [1] : vector<112x128xf32> to vector<112xf32>
    %12 = vector.shape_cast %11 : vector<112xf32> to vector<112x1xf32>
    %cst_7 = arith.constant 1.280000e+02 : f32
    %13 = vector.broadcast %cst_7 : f32 to vector<112x1xf32>
    %14 = arith.divf %12, %13 : vector<112x1xf32>
    %cst_8 = arith.constant 9.99999974E-6 : f32
    %15 = vector.broadcast %cst_8 : f32 to vector<112x1xf32>
    %16 = arith.addf %14, %15 : vector<112x1xf32>
    %17 = math.rsqrt %16 : vector<112x1xf32>
    %18 = vector.broadcast %17 : vector<112x1xf32> to vector<112x128xf32>
    %19 = arith.mulf %9, %18 : vector<112x128xf32>
    %c0_9 = arith.constant 0 : index
    %c0_10 = arith.constant 0 : index
    %20 = vector.load %arg4[%c0_9, %c0_10] : memref<8x128xf32, #tpu.memory_space<vmem>>, vector<1x128xf32>
    %21 = vector.shape_cast %20 : vector<1x128xf32> to vector<128xf32>
    %22 = vector.shape_cast %21 : vector<128xf32> to vector<1x128xf32>
    %23 = vector.broadcast %22 : vector<1x128xf32> to vector<112x128xf32>
    %24 = arith.mulf %19, %23 : vector<112x128xf32>
    %c1 = arith.constant 1 : index
    %c0_11 = arith.constant 0 : index
    %25 = vector.load %arg4[%c1, %c0_11] : memref<8x128xf32, #tpu.memory_space<vmem>>, vector<1x128xf32>
    %26 = vector.shape_cast %25 : vector<1x128xf32> to vector<128xf32>
    %27 = vector.shape_cast %26 : vector<128xf32> to vector<1x128xf32>
    %28 = vector.broadcast %27 : vector<1x128xf32> to vector<112x128xf32>
    %29 = arith.addf %24, %28 : vector<112x128xf32>
    %c0_12 = arith.constant 0 : index
    %c0_13 = arith.constant 0 : index
    %c0_14 = arith.constant 0 : index
    %30 = vector.load %arg5[%c0_12, %c0_13, %c0_14] : memref<1x112x128xf32, #tpu.memory_space<vmem>>, vector<1x112x128xf32>
    %31 = vector.shape_cast %30 : vector<1x112x128xf32> to vector<112x128xf32>
    %32 = vector.shape_cast %29 : vector<112x128xf32> to vector<1x112x128xf32>
    tpu.vector_store %arg5[%c0_12, %c0_13, %c0_14], %32 {strides = array<i32>} : memref<1x112x128xf32, #tpu.memory_space<vmem>>, vector<1x112x128xf32>,
    return
  }
  func.func @transform_0(%arg0: i32, %arg1: i32) -> (i32, i32, i32) {
    %c0_i32 = arith.constant 0 : i32
    %c0_i32_0 = arith.constant 0 : i32
    return %arg0, %arg1, %c0_i32 : i32, i32, i32
  }
  func.func @transform_1(%arg0: i32, %arg1: i32) -> (i32, i32) {
    %c0_i32 = arith.constant 0 : i32
    %c0_i32_0 = arith.constant 0 : i32
    %c0_i32_1 = arith.constant 0 : i32
    return %c0_i32, %c0_i32_0 : i32, i32
  }
  func.func @transform_2(%arg0: i32, %arg1: i32) -> (i32, i32) {
    %c0_i32 = arith.constant 0 : i32
    %c0_i32_0 = arith.constant 0 : i32
    %c0_i32_1 = arith.constant 0 : i32
    return %c0_i32, %c0_i32_0 : i32, i32
  }
  func.func @transform_3(%arg0: i32, %arg1: i32) -> (i32, i32, i32) {
    %c0_i32 = arith.constant 0 : i32
    %c0_i32_0 = arith.constant 0 : i32
    return %arg0, %arg1, %c0_i32 : i32, i32, i32
  }
}

</mosaic_0001>

<bundles_post_ra>
// kernel: tpu_custom_call.1
= control target key start
LH: loop header
LB: loop body
LE: loop exit
PB: predicated region body
PF: predicated region fallthrough
CT: control target
= control target key end

     0   :  { %8 = vsyncpa [#allocation3], 0  ;;  %s1416_s0 = inlined_call_operand.vmem [shape: bf16[2,112,28], index: 0, kind: input, shape index: {}]   ;;  %s1417_s1 = inlined_call_operand.vmem [shape: bf16[28,128], index: 1, kind: input, shape index: {}]   ;;  %s1418_s2 = inlined_call_operand.vmem [shape: f32[8,128], index: 2, kind: input, shape index: {}]   ;;  %s1419_s3 = inlined_call_operand.hbm [shape: f32[2,112,128], index: 3, kind: output, shape index: {}]  }
   0x1   :  { %10 = vsyncpa [#allocation3 + $0x1], 0  ;;  %s1028_s12 = smov 0   ;;  %s1030_s13 = smov 0  }
   0x2   :  { %s1032_s14 = smov 0   ;;  %s1034_s15 = smov 0  }
   0x3   :  { %s1036_s16 = smov 0   ;;  %s1038_s17 = smov 0  }
   0x4 LB: > { %s765_s18 = sadd.s32 4294967295, %s1003_s17   ;;  %s766_s19 = sadd.s32 4294967294, %s1003_s17   ;;  %s1003_s17 = sphi %s1038_s17, %s16_s17   ;;  %s999_s16 = sphi %s1036_s16, %s1426_s16   ;;  %s995_s15 = sphi %s1034_s15, %s1425_s15   ;;  %s991_s14 = sphi %s1032_s14, %s1424_s14   ;;  %s987_s13 = sphi %s1030_s13, %s1423_s13   ;;  %s983_s12 = sphi %s1028_s12, %s1422_s12  }
   0x5   : > { %s28_s20 = sadd.s32 1, %s999_s16  ;;  %s107_s21 = sadd.s32 1, %s991_s14 }
   0x6   : > { %p30_p0 = scmp.ge.s32.totalorder %s28_s20, 2  ;;  %p117_p1 = scmp.ne.s32.totalorder %s991_s14, %s987_s13 }
   0x7   : > { %p118_p2 = scmp.eq.s32.totalorder %s765_s18, 1  ;;  %p123_p3 = scmp.ne.s32.totalorder %s987_s13, %s983_s12 }
   0x8   : > { %s1428_s20 = smov (%p30_p0, %s28_s20), 0  ;;  %p124_p5 = scmp.eq.s32.totalorder %s766_s19, 1 }
   0x9   : > { %p1068_p4 = por %p118_p2, %p117_p1  ;;  %s102_s23 = ssub.s32 %s999_s16, %s1428_s20 }
   0xa   : > { %p769_p6 = scmp.ge.s32.totalorder %s1003_s17, 1  ;;  %p105_p7 = scmp.eq.s32.totalorder %s102_s23, 0 }
   0xb   : > { %p1075_p8 = por %p124_p5, %p123_p3  ;;  %p161_p9 = scmp.lt.s32.totalorder %s1003_s17, 3 }
   0xc   : > { %s1081_s25 = scalar_select %p105_p7, %s991_s14, %s107_s21  }
   0xd   : > { %p162_p10 = pnand %p769_p6, %p161_p9 }
   0xe   : > { %p190_p11 = scmp.lt.s32.totalorder (!%p162_p10), %s995_s15, 1  ;;  %s186_s10 = sand.u32 (!%p162_p10), 1, %s987_s13  }
   0xf   : > { %165 = sbr.rel (%p162_p10) target bundleno = 470 (0x1d6), region = 32  ;;  %s669_s5 = scalar_lea.sflag (!%p162_p10), [#allocation3], %s186_s10 }
  0x10   : > { %s1226_s19 = smul.u32 (!%p162_p10), 112, %s186_s10  ;;  %s945_s11 = scalar_lea.hbm (!%p162_p10), %s1419_s3, 224 }
  0x11   : > { %s834_s27 = smul.u32 (!%p162_p10), 112, %s995_s15 }
  0x12   : > { %s1258_s26 = scalar_lea.vmem (!%p162_p10), [#allocation2], %s1226_s19 }
  0x13   : > { %s682_s29 = scalar_lea.hbm (!%p162_p10), %s1419_s3, %s834_s27 }
  0x14   : > { %v805_v0 = vld [vmem:[%s1417_s1 + $0x8] sm:$0xf]  ;;  %v825_v1 = vld [vmem:[%s1417_s1 + $0x8] sm:$0x30]  ;;  %vm287_vm0 = vcmask 1045504   ;;  %s191_s30 = scalar_select %p190_p11, %s995_s15, 1 }
  0x15   : > { %v806_v2 = vor.u32 %v825_v1, %v805_v0  ;;  %v824_v4 = vld [vmem:[%s1417_s1] sm:$0xff]  ;;  %vm265_vm1 = vcmask 228352   ;;  %v1005_v26 = vmov 128.0   ;;  %s685_s4 = sshll.u32 %s682_s29, 4  ;;  %s686_s4 = int_to_ptr.hbm [resolvable:$true] %s685_s4 }
  0x16   : > { %s833_s6 = smul.u32 56, %s191_s30  ;;  %895 = vrcp.f32 %v1005_v26  ;;  %s683_s30 = sshll.u32 %s1258_s26, 4  ;;  %s684_s30 = int_to_ptr.vmem [resolvable:$true] %s683_s30 }
  0x17   : > { %v289_v3 = vsel %vm287_vm0, %v806_v2, 0 }
  0x18   : > { %297 = vmatpush.bf16.msra.mxu0 %v289_v3  ;;  %826 = vmatpush.bf16.msra.mxu1 %v289_v3  ;;  %s197_s9 = scalar_lea.vmem %s1416_s0, %s833_s6  ;;  %s939_s6 = sshra.s32 %s686_s4, 4  ;;  %s940_s6 = int_to_ptr.hbm [resolvable:$true] %s939_s6 }
  0x19   : > { %827 = vmatpush.bf16.msra.mxu2 %v289_v3  ;;  %828 = vmatpush.bf16.msra.mxu3 %v289_v3  ;;  %v817_v5 = vld [vmem:[%s197_s9] sm:$0xff]  ;;  %v819_v6 = vld [vmem:[%s197_s9 + $0x10] sm:$0xff]  ;;  %v822_v8 = vld [vmem:[%s197_s9 + $0x28] sm:$0xff]  ;;  %s941_s7 = scalar_lea.hbm %s940_s6, 112  ;;  %p946_p1 = scmp.lt.s32.totalorder %s940_s6, %s1419_s3 }
  0x1a   : > { %v821_v7 = vld [vmem:[%s197_s9 + $0x20] sm:$0xff]  ;;  %v818_v9 = vld [vmem:[%s197_s9 + $0x8] sm:$0xff]  ;;  %v820_v10 = vld [vmem:[%s197_s9 + $0x18] sm:$0xff]  ;;  %p942_p12 = scmp.ne.s32.totalorder %s940_s6, %s941_s7  ;;  %p947_p2 = scmp.lt.s32.totalorder %s945_s11, %s941_s7 }
  0x1b   : > { %v823_v11 = vld [vmem:[%s197_s9 + $0x30] sm:$0xff] }
  0x1c   : > { %298 = vmatpush.bf16.msra.mxu0 %v824_v4  ;;  %829 = vmatpush.bf16.msra.mxu1 %v824_v4  ;;  %v896_v27 = vpop.eup %895  ;;  %p943_p13 = pnand %p942_p12, %p1068_p4  ;;  %p948_p3 = por %p947_p2, %p946_p1 }
  0x1d   : > { %830 = vmatpush.bf16.msra.mxu2 %v824_v4  ;;  %831 = vmatpush.bf16.msra.mxu3 %v824_v4  ;;  %v364_v28 = vmul.f32 128.0, %v896_v27  ;;  %vm368_vm2 = vweird.f32 %v896_v27 }
  0x1e   : > { %p944_p0 = pneg %p943_p13 }
  0x1f   : > { %807 = vmatmul.msk.bf16.vlgmr.msra.gmra.mxu0 %vm265_vm1, %v817_v5  ;;  %809 = vmatmul.msk.bf16.vlgmr.msra.gmra.mxu1 %vm265_vm1, %v819_v6  ;;  %v365_v29 = vsub.f32 1.0, %v364_v28 }
  0x20   : > { %811 = vmatmul.msk.bf16.vlgmr.msra.gmra.mxu2 %vm265_vm1, %v821_v7  ;;  %812 = vmatmul.msk.bf16.vlgmr.msra.gmra.mxu3 %vm265_vm1, %v822_v8  ;;  %p949_p5 = pnand %p948_p3, %p944_p0 }
  0x21   : > { %v366_v30 = vmul.f32 %v896_v27, %v365_v29 }
  0x23   : > { %v367_v31 = vadd.f32 %v896_v27, %v366_v30 }
  0x25   : > { %v1115_v32 = vsel %vm368_vm2, %v896_v27, %v367_v31 }
  0x2f   : > { %808 = vmatmul.msk.bf16.gmra.mxu0 %vm265_vm1, %v818_v9  ;;  %810 = vmatmul.msk.bf16.gmra.mxu1 %vm265_vm1, %v820_v10 }
  0x30   : > { %813 = vmatmul.msk.bf16.gmra.mxu3 %vm265_vm1, %v823_v11 }
  0x9c   : > { %v300_v12 = vpop.f32.mrf.mxu0  ;;  %v310_v13 = vpop.f32.mrf.mxu1 }
  0x9d   : > { %343 = vadd.xlane.f32.xlu2 %v310_v13  ;;  %335 = vadd.xlane.f32.xlu0 %v300_v12 }
  0xa3   : > { %v320_v14 = vpop.f32.mrf.mxu2  ;;  %v325_v15 = vpop.f32.mrf.mxu3 }
  0xa4   : > { %355 = vadd.xlane.f32.xlu1 %v325_v15  ;;  %v302_v16 = vpop.f32.mrf.mxu0  ;;  %v312_v17 = vpop.f32.mrf.mxu1 }
  0xa5   : > { %351 = vadd.xlane.f32.xlu2 %v320_v14  ;;  %337 = vadd.xlane.f32.xlu0 %v302_v16 }
  0xab   : > { %v322_v18 = vpop.f32.mrf.mxu2  ;;  %v1100_v20 = vpop.f32.mrf.mxu3 }
  0xac   : > { %v1097_v19 = vpop.f32.mrf.mxu0  ;;  %v315_v21 = vpop.f32.mrf.mxu1 }
  0xad   : > { %345 = vadd.xlane.f32.xlu2 %v312_v17  ;;  %353 = vadd.xlane.f32.xlu0 %v322_v18 }
  0xae   : > { %339 = vadd.xlane.f32.xlu1 %v1097_v19 }
  0xb3   : > { %v1106_v23 = vpop.f32.mrf.mxu3 }
  0xb4   : > { %v1102_v22 = vpop.f32.mrf.mxu0  ;;  %v1108_v24 = vpop.f32.mrf.mxu1 }
  0xb5   : > { %357 = vadd.xlane.f32.xlu2 %v1100_v20  ;;  %347 = vadd.xlane.f32.xlu0 %v315_v21 }
  0xb6   : > { %341 = vadd.xlane.f32.xlu1 %v1102_v22 }
  0xbb   : > { %v1112_v25 = vpop.f32.mrf.mxu3 }
  0xbd   : > { %359 = vadd.xlane.f32.xlu0 %v1106_v23 }
  0xbe   : > { %349 = vadd.xlane.f32.xlu1 %v1108_v24 }
  0xc6   : > { %361 = vadd.xlane.f32.xlu1 %v1112_v25 }
 0x110   : > { %v344_v33 = vpop.xlane.xlu2 %343  ;;  %v336_v34 = vpop.xlane.xlu0 %335 }
 0x111   : > { %v374_v35 = vmul.f32 %v1115_v32, %v344_v33  ;;  %v370_v36 = vmul.f32 %v1115_v32, %v336_v34 }
 0x113   : > { %v1119_v37 = vsub.f32 %v310_v13, %v374_v35  ;;  %v1121_v38 = vsub.f32 %v300_v12, %v370_v36 }
 0x115   : > { %v398_v39 = vmul.f32 %v1121_v38, %v1121_v38  ;;  %v402_v40 = vmul.f32 %v1119_v37, %v1119_v37 }
 0x117   : > { %v356_v41 = vpop.xlane.xlu1 %355  ;;  %412 = vadd.xlane.f32.xlu2 %v398_v39  ;;  %420 = vadd.xlane.f32.xlu0 %v402_v40 }
 0x118   : > { %v380_v42 = vmul.f32 %v1115_v32, %v356_v41  ;;  %v352_v43 = vpop.xlane.xlu2 %351  ;;  %v338_v44 = vpop.xlane.xlu0 %337 }
 0x119   : > { %v378_v45 = vmul.f32 %v1115_v32, %v352_v43  ;;  %v371_v48 = vmul.f32 %v1115_v32, %v338_v44 }
 0x11a   : > { %v1129_v46 = vsub.f32 %v325_v15, %v380_v42 }
 0x11b   : > { %v1131_v47 = vsub.f32 %v320_v14, %v378_v45  ;;  %v1138_v53 = vsub.f32 %v302_v16, %v371_v48 }
 0x11c   : > { %v408_v49 = vmul.f32 %v1129_v46, %v1129_v46 }
 0x11d   : > { %v406_v50 = vmul.f32 %v1131_v47, %v1131_v47  ;;  %v399_v59 = vmul.f32 %v1138_v53, %v1138_v53 }
 0x11f   : > { %432 = vadd.xlane.f32.xlu0 %v408_v49  ;;  %428 = vadd.xlane.f32.xlu1 %v406_v50 }
 0x120   : > { %v346_v51 = vpop.xlane.xlu2 %345  ;;  %v354_v52 = vpop.xlane.xlu0 %353 }
 0x121   : > { %v375_v54 = vmul.f32 %v1115_v32, %v346_v51  ;;  %v379_v55 = vmul.f32 %v1115_v32, %v354_v52  ;;  %v340_v56 = vpop.xlane.xlu1 %339 }
 0x122   : > { %v372_v62 = vmul.f32 %v1115_v32, %v340_v56 }
 0x123   : > { %v1142_v57 = vsub.f32 %v312_v17, %v375_v54  ;;  %v1144_v58 = vsub.f32 %v322_v18, %v379_v55 }
 0x124   : > { %v1155_v2 = vsub.f32 %v1097_v19, %v372_v62 }
 0x125   : > { %v407_v60 = vmul.f32 %v1144_v58, %v1144_v58  ;;  %v403_v61 = vmul.f32 %v1142_v57, %v1142_v57 }
 0x126   : > { %v400_v8 = vmul.f32 %v1155_v2, %v1155_v2 }
 0x127   : > { %414 = vadd.xlane.f32.xlu0 %v399_v59  ;;  %430 = vadd.xlane.f32.xlu2 %v407_v60 }
 0x128   : > { %422 = vadd.xlane.f32.xlu1 %v403_v61  ;;  %v348_v63 = vpop.xlane.xlu0 %347  ;;  %v358_v3 = vpop.xlane.xlu2 %357 }
 0x129   : > { %v376_v0 = vmul.f32 %v1115_v32, %v348_v63  ;;  %v342_v1 = vpop.xlane.xlu1 %341  ;;  %v381_v7 = vmul.f32 %v1115_v32, %v358_v3 }
 0x12a   : > { %v373_v5 = vmul.f32 %v1115_v32, %v342_v1 }
 0x12b   : > { %v1157_v4 = vsub.f32 %v315_v21, %v376_v0  ;;  %v1169_v11 = vsub.f32 %v1100_v20, %v381_v7 }
 0x12c   : > { %v1166_v9 = vsub.f32 %v1102_v22, %v373_v5 }
 0x12d   : > { %v404_v6 = vmul.f32 %v1157_v4, %v1157_v4  ;;  %v409_v17 = vmul.f32 %v1169_v11, %v1169_v11 }
 0x12e   : > { %v401_v16 = vmul.f32 %v1166_v9, %v1166_v9 }
 0x12f   : > { %424 = vadd.xlane.f32.xlu2 %v404_v6  ;;  %v1220_v6 = vld [vmem:[%s1418_s2] ss:$0 sm:$0xff] }
 0x130   : > { %416 = vadd.xlane.f32.xlu1 %v400_v8  ;;  %v360_v12 = vpop.xlane.xlu0 %359 }
 0x131   : > { %v350_v10 = vpop.xlane.xlu1 %349  ;;  %v382_v15 = vmul.f32 %v1115_v32, %v360_v12 }
 0x132   : > { %v377_v13 = vmul.f32 %v1115_v32, %v350_v10 }
 0x133   : > { %v1183_v19 = vsub.f32 %v1106_v23, %v382_v15 }
 0x134   : > { %v1173_v14 = vsub.f32 %v1108_v24, %v377_v13  ;;  %v1234_v13 = vld [vmem:[%s1418_s2 + $0x1] ss:$0 sm:$0xff] }
 0x135   : > { %v410_v24 = vmul.f32 %v1183_v19, %v1183_v19 }
 0x136   : > { %v405_v18 = vmul.f32 %v1173_v14, %v1173_v14 }
 0x137   : > { %418 = vadd.xlane.f32.xlu2 %v401_v16 }
 0x138   : > { %434 = vadd.xlane.f32.xlu1 %v409_v17  ;;  %426 = vadd.xlane.f32.xlu0 %v405_v18 }
 0x139   : > { %v362_v20 = vpop.xlane.xlu1 %361 }
 0x13a   : > { %v383_v21 = vmul.f32 %v1115_v32, %v362_v20 }
 0x13c   : > { %v1187_v22 = vsub.f32 %v1112_v25, %v383_v21 }
 0x13e   : > { %v411_v26 = vmul.f32 %v1187_v22, %v1187_v22 }
 0x13f   : > { %436 = vadd.xlane.f32.xlu2 %v410_v24 }
 0x140   : > { %438 = vadd.xlane.f32.xlu0 %v411_v26 }
 0x18a   : > { %v413_v27 = vpop.xlane.xlu2 %412  ;;  %v421_v28 = vpop.xlane.xlu0 %420 }
 0x18b   : > { %v440_v29 = vmul.f32 %v413_v27, %v1115_v32  ;;  %v444_v23 = vmul.f32 %v421_v28, %v1115_v32 }
 0x18d   : > { %v454_v30 = vadd.f32 1e-05, %v440_v29  ;;  %v458_v31 = vadd.f32 1e-05, %v444_v23 }
 0x18f   : > { %897 = vrsqrt.f32 %v454_v30  ;;  %vm474_vm5 = vweird.f32 %v454_v30  ;;  %vm514_vm7 = vweird.f32 %v458_v31 }
 0x190   : > { %899 = vrsqrt.f32 %v458_v31 }
 0x192   : > { %v433_v25 = vpop.xlane.xlu0 %432  ;;  %v429_v33 = vpop.xlane.xlu1 %428 }
 0x193   : > { %v450_v34 = vmul.f32 %v433_v25, %v1115_v32  ;;  %v448_v35 = vmul.f32 %v429_v33, %v1115_v32 }
 0x195   : > { %v898_v36 = vpop.eup %897  ;;  %v1197_v39 = vadd.f32 1e-05, %v450_v34  ;;  %v1199_v40 = vadd.f32 1e-05, %v448_v35 }
 0x196   : > { %v900_v41 = vpop.eup %899  ;;  %v469_v42 = vmul.f32 %v898_v36, %v454_v30  ;;  %vm475_vm3 = vweird.f32 %v898_v36 }
 0x197   : > { %v509_v43 = vmul.f32 %v900_v41, %v458_v31  ;;  %901 = vrsqrt.f32 %v1197_v39  ;;  %vm515_vm4 = vweird.f32 %v900_v41  ;;  %vm476_vm6 = vmor %vm474_vm5, %vm475_vm3  ;;  %vm574_vm9 = vweird.f32 %v1197_v39 }
 0x198   : > { %v470_v44 = vmul.f32 %v898_v36, %v469_v42  ;;  %903 = vrsqrt.f32 %v1199_v40  ;;  %vm516_vm8 = vmor %vm514_vm7, %vm515_vm4  ;;  %vm554_vm12 = vweird.f32 %v1199_v40 }
 0x199   : > { %v510_v45 = vmul.f32 %v900_v41, %v509_v43 }
 0x19a   : > { %v471_v48 = vmul.f32 0.5, %v470_v44  ;;  %v431_v49 = vpop.xlane.xlu2 %430  ;;  %v415_v50 = vpop.xlane.xlu0 %414 }
 0x19b   : > { %v511_v51 = vmul.f32 0.5, %v510_v45  ;;  %v449_v52 = vmul.f32 %v431_v49, %v1115_v32  ;;  %v441_v54 = vmul.f32 %v415_v50, %v1115_v32  ;;  %v423_v55 = vpop.xlane.xlu1 %422 }
 0x19c   : > { %v472_v56 = vsub.f32 1.5, %v471_v48  ;;  %v445_v59 = vmul.f32 %v423_v55, %v1115_v32 }
 0x19d   : > { %v1206_v60 = vpop.eup %901  ;;  %v512_v61 = vsub.f32 1.5, %v511_v51  ;;  %v1209_v62 = vadd.f32 1e-05, %v449_v52  ;;  %v1211_v63 = vadd.f32 1e-05, %v441_v54 }
 0x19e   : > { %v904_v0 = vpop.eup %903  ;;  %v473_v1 = vmul.f32 %v898_v36, %v472_v56  ;;  %v569_v3 = vmul.f32 %v1206_v60, %v1197_v39  ;;  %v1215_v5 = vadd.f32 1e-05, %v445_v59  ;;  %vm575_vm10 = vweird.f32 %v1206_v60 }
 0x19f   : > { %v513_v7 = vmul.f32 %v900_v41, %v512_v61  ;;  %v549_v8 = vmul.f32 %v904_v0, %v1199_v40  ;;  %905 = vrsqrt.f32 %v1209_v62  ;;  %vm555_vm11 = vweird.f32 %v904_v0  ;;  %vm576_vm13 = vmor %vm574_vm9, %vm575_vm10 }
 0x1a0   : > { %v477_v10 = vsel %vm476_vm6, %v898_v36, %v473_v1  ;;  %v570_v12 = vmul.f32 %v1206_v60, %v569_v3  ;;  %907 = vrsqrt.f32 %v1211_v63  ;;  %vm564_vm14 = vweird.f32 %v1209_v62  ;;  %vm556_vm15 = vmor %vm554_vm12, %vm555_vm11 }
 0x1a1   : > { %v608_v15 = vmul.f32 %v477_v10, %v1121_v38  ;;  %v517_v16 = vsel %vm516_vm8, %v900_v41, %v513_v7  ;;  %v550_v17 = vmul.f32 %v904_v0, %v549_v8  ;;  %909 = vrsqrt.f32 %v1215_v5 }
 0x1a2   : > { %v612_v18 = vmul.f32 %v517_v16, %v1119_v37  ;;  %v571_v20 = vmul.f32 0.5, %v570_v12  ;;  %v425_v21 = vpop.xlane.xlu2 %424  ;;  %vm484_vm0 = vweird.f32 %v1211_v63  ;;  %vm524_vm3 = vweird.f32 %v1215_v5 }
 0x1a3   : > { %v624_v24 = vmul.f32 %v1220_v6, %v608_v15  ;;  %v551_v26 = vmul.f32 0.5, %v550_v17  ;;  %v446_v27 = vmul.f32 %v425_v21, %v1115_v32  ;;  %v417_v28 = vpop.xlane.xlu1 %416 }
 0x1a4   : > { %v628_v29 = vmul.f32 %v1220_v6, %v612_v18  ;;  %v572_v38 = vsub.f32 1.5, %v571_v20  ;;  %v442_v37 = vmul.f32 %v417_v28, %v1115_v32 }
 0x1a5   : > { %v1245_v23 = vpop.eup %905  ;;  %v640_v30 = vadd.f32 %v1234_v13, %v624_v24  ;;  %v552_v31 = vsub.f32 1.5, %v551_v26  ;;  %v1248_v25 = vadd.f32 1e-05, %v446_v27 }
 0x1a6   : > { %v1250_v33 = vpop.eup %907  ;;  %v644_v34 = vadd.f32 %v1234_v13, %v628_v29  ;;  %v573_v35 = vmul.f32 %v1206_v60, %v572_v38  ;;  %v559_v36 = vmul.f32 %v1245_v23, %v1209_v62  ;;  %v1272_v39 = vadd.f32 1e-05, %v442_v37 }
 0x1a7   : > { %654 = vst [vmem:[%s1258_s26] sm:$0xff] %v640_v30  ;;  %v553_v41 = vmul.f32 %v904_v0, %v552_v31  ;;  %v479_v42 = vmul.f32 %v1250_v33, %v1211_v63  ;;  %911 = vrsqrt.f32 %v1248_v25  ;;  %v910_v40 = vpop.eup %909  ;;  %vm565_vm1 = vweird.f32 %v1245_v23 }
 0x1a8   : > { %658 = vst [vmem:[%s1258_s26 + $0x20] sm:$0xff] %v644_v34  ;;  %v577_v43 = vsel %vm576_vm13, %v1206_v60, %v573_v35  ;;  %v560_v44 = vmul.f32 %v1245_v23, %v559_v36  ;;  %v519_v50 = vmul.f32 %v910_v40, %v1215_v5  ;;  %913 = vrsqrt.f32 %v1272_v39  ;;  %vm566_vm4 = vmor %vm564_vm14, %vm565_vm1 }
 0x1a9   : > { %v618_v45 = vmul.f32 %v577_v43, %v1129_v46  ;;  %v557_v48 = vsel %vm556_vm15, %v904_v0, %v553_v41  ;;  %v480_v49 = vmul.f32 %v1250_v33, %v479_v42  ;;  %vm485_vm2 = vweird.f32 %v1250_v33 }
 0x1aa   : > { %v616_v51 = vmul.f32 %v557_v48, %v1131_v47  ;;  %v561_v52 = vmul.f32 0.5, %v560_v44  ;;  %v419_v54 = vpop.xlane.xlu2 %418  ;;  %v520_v59 = vmul.f32 %v910_v40, %v519_v50  ;;  %vm525_vm5 = vweird.f32 %v910_v40  ;;  %vm486_vm6 = vmor %vm484_vm0, %vm485_vm2 }
 0x1ab   : > { %v634_v55 = vmul.f32 %v1220_v6, %v618_v45  ;;  %v481_v56 = vmul.f32 0.5, %v480_v49  ;;  %v427_v46 = vpop.xlane.xlu0 %426  ;;  %v435_v60 = vpop.xlane.xlu1 %434  ;;  %v443_v47 = vmul.f32 %v419_v54, %v1115_v32  ;;  %vm526_vm7 = vmor %vm524_vm3, %vm525_vm5  ;;  %vm534_vm9 = vweird.f32 %v1248_v25 }
 0x1ac   : > { %v632_v61 = vmul.f32 %v1220_v6, %v616_v51  ;;  %v562_v0 = vsub.f32 1.5, %v561_v52  ;;  %v447_v1 = vmul.f32 %v427_v46, %v1115_v32  ;;  %v521_v10 = vmul.f32 0.5, %v520_v59 }
 0x1ad   : > { %v912_v3 = vpop.eup %911  ;;  %v650_v7 = vadd.f32 %v1234_v13, %v634_v55  ;;  %v482_v8 = vsub.f32 1.5, %v481_v56  ;;  %v451_v12 = vmul.f32 %v435_v60, %v1115_v32  ;;  %v1297_v21 = vadd.f32 1e-05, %v443_v47 }
 0x1ae   : > { %v648_v15 = vadd.f32 %v1234_v13, %v632_v61  ;;  %v563_v16 = vmul.f32 %v1245_v23, %v562_v0  ;;  %v529_v17 = vmul.f32 %v912_v3, %v1248_v25  ;;  %v522_v20 = vsub.f32 1.5, %v521_v10  ;;  %v914_v24 = vpop.eup %913 }
 0x1af   : > { %664 = vst [vmem:[%s1258_s26 + $0x50] sm:$0xff] %v650_v7  ;;  %v483_v18 = vmul.f32 %v1250_v33, %v482_v8  ;;  %v1305_v28 = vadd.f32 1e-05, %v447_v1  ;;  %v1307_v62 = vadd.f32 1e-05, %v451_v12  ;;  %v489_v30 = vmul.f32 %v914_v24, %v1272_v39 }
 0x1b0   : > { %662 = vst [vmem:[%s1258_s26 + $0x40] sm:$0xff] %v648_v15  ;;  %v567_v26 = vsel %vm566_vm4, %v1245_v23, %v563_v16  ;;  %v530_v27 = vmul.f32 %v912_v3, %v529_v17  ;;  %v523_v37 = vmul.f32 %v910_v40, %v522_v20  ;;  %915 = vrsqrt.f32 %v1297_v21 }
 0x1b1   : > { %v617_v29 = vmul.f32 %v567_v26, %v1144_v58  ;;  %v487_v38 = vsel %vm486_vm6, %v1250_v33, %v483_v18  ;;  %vm535_vm8 = vweird.f32 %v912_v3  ;;  %v490_v35 = vmul.f32 %v914_v24, %v489_v30 }
 0x1b2   : > { %v609_v31 = vmul.f32 %v487_v38, %v1138_v53  ;;  %v531_v23 = vmul.f32 0.5, %v530_v27  ;;  %v527_v34 = vsel %vm526_vm7, %v910_v40, %v523_v37  ;;  %917 = vrsqrt.f32 %v1305_v28  ;;  %v437_v53 = vpop.xlane.xlu2 %436  ;;  %vm536_vm10 = vmor %vm534_vm9, %vm535_vm8 }
 0x1b3   : > { %v633_v63 = vmul.f32 %v1220_v6, %v617_v29  ;;  %v613_v33 = vmul.f32 %v527_v34, %v1142_v57  ;;  %v439_v5 = vpop.xlane.xlu0 %438  ;;  %v491_v42 = vmul.f32 0.5, %v490_v35  ;;  %919 = vrsqrt.f32 %v1307_v62 }
 0x1b4   : > { %v625_v58 = vmul.f32 %v1220_v6, %v609_v31  ;;  %v532_v36 = vsub.f32 1.5, %v531_v23  ;;  %vm495_vm11 = vweird.f32 %v914_v24  ;;  %v452_v45 = vmul.f32 %v437_v53, %v1115_v32 }
 0x1b5   : > { %v649_v41 = vadd.f32 %v1234_v13, %v633_v63  ;;  %v629_v43 = vmul.f32 %v1220_v6, %v613_v33  ;;  %v492_v57 = vsub.f32 1.5, %v491_v42  ;;  %v453_v48 = vmul.f32 %v439_v5, %v1115_v32 }
 0x1b6   : > { %v641_v40 = vadd.f32 %v1234_v13, %v625_v58  ;;  %v533_v44 = vmul.f32 %v912_v3, %v532_v36  ;;  %v916_v49 = vpop.eup %915  ;;  %vm494_vm12 = vweird.f32 %v1272_v39  ;;  %v1335_v56 = vadd.f32 1e-05, %v452_v45 }
 0x1b7   : > { %663 = vst [vmem:[%s1258_s26 + $0x48] sm:$0xff] %v649_v41  ;;  %v645_v50 = vadd.f32 %v1234_v13, %v629_v43  ;;  %v493_v54 = vmul.f32 %v914_v24, %v492_v57  ;;  %v499_v25 = vmul.f32 %v916_v49, %v1297_v21  ;;  %vm496_vm13 = vmor %vm494_vm12, %vm495_vm11  ;;  %v1337_v59 = vadd.f32 1e-05, %v453_v48 }
 0x1b8   : > { %655 = vst [vmem:[%s1258_s26 + $0x8] sm:$0xff] %v641_v40  ;;  %v537_v51 = vsel %vm536_vm10, %v912_v3, %v533_v44  ;;  %v918_v55 = vpop.eup %917  ;;  %921 = vrsqrt.f32 %v1335_v56  ;;  %vm505_vm14 = vweird.f32 %v916_v49  ;;  %vm504_vm15 = vweird.f32 %v1297_v21 }
 0x1b9   : > { %v614_v52 = vmul.f32 %v537_v51, %v1157_v4  ;;  %659 = vst [vmem:[%s1258_s26 + $0x28] sm:$0xff] %v645_v50  ;;  %v920_v32 = vpop.eup %919  ;;  %v497_v60 = vsel %vm496_vm13, %v914_v24, %v493_v54  ;;  %v500_v61 = vmul.f32 %v916_v49, %v499_v25  ;;  %v539_v4 = vmul.f32 %v918_v55, %v1305_v28  ;;  %vm506_vm1 = vmor %vm504_vm15, %vm505_vm14 }
 0x1ba   : > { %v610_v0 = vmul.f32 %v497_v60, %v1155_v2  ;;  %v579_v39 = vmul.f32 %v920_v32, %v1307_v62  ;;  %923 = vrsqrt.f32 %v1337_v59  ;;  %vm545_vm0 = vweird.f32 %v918_v55 }
 0x1bb   : > { %v630_v46 = vmul.f32 %v1220_v6, %v614_v52  ;;  %v501_v1 = vmul.f32 0.5, %v500_v61  ;;  %v540_v3 = vmul.f32 %v918_v55, %v539_v4  ;;  %vm585_vm2 = vweird.f32 %v920_v32 }
 0x1bc   : > { %v626_v7 = vmul.f32 %v1220_v6, %v610_v0  ;;  %v580_v8 = vmul.f32 %v920_v32, %v579_v39  ;;  %vm544_vm3 = vweird.f32 %v1305_v28  ;;  %vm584_vm5 = vweird.f32 %v1307_v62 }
 0x1bd   : > { %v646_v47 = vadd.f32 %v1234_v13, %v630_v46  ;;  %v502_v10 = vsub.f32 1.5, %v501_v1  ;;  %v541_v12 = vmul.f32 0.5, %v540_v3  ;;  %vm546_vm4 = vmor %vm544_vm3, %vm545_vm0  ;;  %vm594_vm9 = vweird.f32 %v1335_v56 }
 0x1be   : > { %v642_v2 = vadd.f32 %v1234_v13, %v626_v7  ;;  %v581_v15 = vmul.f32 0.5, %v580_v8  ;;  %v922_v20 = vpop.eup %921  ;;  %vm586_vm6 = vmor %vm584_vm5, %vm585_vm2  ;;  %vm604_vm11 = vweird.f32 %v1337_v59 }
 0x1bf   : > { %660 = vst [vmem:[%s1258_s26 + $0x30] sm:$0xff] %v646_v47  ;;  %v503_v16 = vmul.f32 %v916_v49, %v502_v10  ;;  %v542_v17 = vsub.f32 1.5, %v541_v12  ;;  %v589_v21 = vmul.f32 %v922_v20, %v1335_v56  ;;  %vm595_vm7 = vweird.f32 %v922_v20 }
 0x1c0   : > { %656 = vst [vmem:[%s1258_s26 + $0x10] sm:$0xff] %v642_v2  ;;  %v582_v18 = vsub.f32 1.5, %v581_v15  ;;  %v924_v27 = vpop.eup %923  ;;  %vm596_vm10 = vmor %vm594_vm9, %vm595_vm7 }
 0x1c1   : > { %v507_v24 = vsel %vm506_vm1, %v916_v49, %v503_v16  ;;  %v543_v26 = vmul.f32 %v918_v55, %v542_v17  ;;  %v599_v30 = vmul.f32 %v924_v27, %v1337_v59  ;;  %v590_v63 = vmul.f32 %v922_v20, %v589_v21 }
 0x1c2   : > { %v611_v29 = vmul.f32 %v507_v24, %v1166_v9  ;;  %v583_v38 = vmul.f32 %v920_v32, %v582_v18  ;;  %vm605_vm8 = vweird.f32 %v924_v27 }
 0x1c3   : > { %v547_v37 = vsel %vm546_vm4, %v918_v55, %v543_v26  ;;  %v600_v34 = vmul.f32 %v924_v27, %v599_v30  ;;  %v591_v58 = vmul.f32 0.5, %v590_v63  ;;  %vm606_vm12 = vmor %vm604_vm11, %vm605_vm8 }
 0x1c4   : > { %v627_v31 = vmul.f32 %v1220_v6, %v611_v29  ;;  %v615_v23 = vmul.f32 %v547_v37, %v1173_v14  ;;  %v587_v28 = vsel %vm586_vm6, %v920_v32, %v583_v38 }
 0x1c5   : > { %v619_v9 = vmul.f32 %v587_v28, %v1169_v11  ;;  %v601_v36 = vmul.f32 0.5, %v600_v34  ;;  %v592_v14 = vsub.f32 1.5, %v591_v58 }
 0x1c6   : > { %v643_v62 = vadd.f32 %v1234_v13, %v627_v31  ;;  %v631_v35 = vmul.f32 %v1220_v6, %v615_v23 }
 0x1c7   : > { %v635_v33 = vmul.f32 %v1220_v6, %v619_v9  ;;  %v602_v11 = vsub.f32 1.5, %v601_v36  ;;  %v593_v41 = vmul.f32 %v922_v20, %v592_v14 }
 0x1c8   : > { %657 = vst [vmem:[%s1258_s26 + $0x18] sm:$0xff] %v643_v62  ;;  %v647_v53 = vadd.f32 %v1234_v13, %v631_v35 }
 0x1c9   : > { %v651_v5 = vadd.f32 %v1234_v13, %v635_v33  ;;  %v603_v42 = vmul.f32 %v924_v27, %v602_v11  ;;  %v597_v40 = vsel %vm596_vm10, %v922_v20, %v593_v41 }
 0x1ca   : > { %661 = vst [vmem:[%s1258_s26 + $0x38] sm:$0xff] %v647_v53  ;;  %v620_v43 = vmul.f32 %v597_v40, %v1183_v19 }
 0x1cb   : > { %665 = vst [vmem:[%s1258_s26 + $0x58] sm:$0xff] %v651_v5  ;;  %v607_v44 = vsel %vm606_vm12, %v924_v27, %v603_v42 }
 0x1cc   : > { %v621_v57 = vmul.f32 %v607_v44, %v1187_v22  ;;  %v636_v45 = vmul.f32 %v1220_v6, %v620_v43 }
 0x1ce   : > { %v637_v48 = vmul.f32 %v1220_v6, %v621_v57  ;;  %v652_v49 = vadd.f32 %v1234_v13, %v636_v45 }
 0x1d0   : > { %v653_v50 = vadd.f32 %v1234_v13, %v637_v48  ;;  %666 = vst [vmem:[%s1258_s26 + $0x60] sm:$0xff] %v652_v49 }
 0x1d2   : > { %667 = vst [vmem:[%s1258_s26 + $0x68] sm:$0xff] %v653_v50 }
 0x1d3   : > { %952 = shalt.err (!%p949_p5)
}
 0x1d4   : > { %s1006_s10 = smov 128   ;;  %s1007_s21 = smov 8  }
 0x1d5   : > { %835 = dma.vmem_to_hbm [thread:$0]  (%p1068_p4), %s684_s30, 1792, %s686_s4, %s669_s5, %s1006_s10, %s1006_s10, %s1007_s21  }
 0x1d6 PF: > { %p841_p6 = scmp.ge.s32.totalorder %s1003_s17, 2  ;;  %s700_s23 = sand.u32 1, %s983_s12  }
 0x1d7   : > { %s701_s26 = scalar_lea.sflag [#allocation3], %s700_s23 }
 0x1d8   : > { %p838_p7 = pnand %p841_p6, %p1075_p8 }
 0x1da   : > { %p839_p9 = pneg %p838_p7 }
 0x1dc   : > { %978 = dma.done.wait (%p839_p9), %s701_s26, 1792  }
 0x1dd   : > { %980 = vsyncadd (%p839_p9), %s701_s26, 4294965504  ;;  %s16_s17 = sadd.s32 1, %s1003_s17   ;;  %s1422_s12 = smov %s987_s13 }
 0x1de   : > { %p13_p10 = scmp.ge.s32.totalorder %s16_s17, 4   ;;  %s1423_s13 = smov %s991_s14 }
 0x1df   : > { %s1424_s14 = smov %s1081_s25  ;;  %s1425_s15 = smov %s999_s16 }
 0x1e0   : > { %s1426_s16 = smov %s1428_s20  ;;  %15 = sbr.rel (!%p13_p10) target bundleno = 4 (0x4), region = 67 }
 0x1e5   :  { %707 = vsyncpa [#allocation3], 1 }
 0x1e6   :  { %709 = vsyncpa [#allocation3 + $0x1], 1 }

</bundles_post_ra>
